<compile_context>
chip_gen: v5e
topology: v5e:2x2
jax: 0.10.0
libtpu: 0.0.40
codegen_flags: <defaults>
</compile_context>

<pallas_src>
import jax
import jax.numpy as jnp
from jax.experimental import pallas as pl
from jax.experimental.pallas import tpu as pltpu


def _round_up(x: int, m: int) -> int:
    return (x + m - 1) // m * m


# ---------------------------------------------------------------------------
# Pallas kernel: fused 3-layer MLP + activations.
# Grid = (batch tiles, d_out tiles).  Layers 1-2 run once per batch tile
# (j == 0) into a bf16 VMEM scratch; each d_out tile runs only layer 3 + tanh.
# ---------------------------------------------------------------------------
def generator_fnn_kernel(x_ref, bias1_ref, w1_ref, w2_ref, b2_ref,
                         w3_ref, b3_ref, o_ref, h2_ref):
    neg = jnp.float32(0.01)

    @pl.when(pl.program_id(1) == 0)
    def _():
        # Dense 1: x @ W1[:L] + (embedding-folded per-row bias) -> LeakyReLU
        h = jnp.dot(x_ref[...], w1_ref[...],
                    preferred_element_type=jnp.float32)
        h = h + bias1_ref[...]
        h = jnp.maximum(h, neg * h)
        # Dense 2: Linear -> LeakyReLU
        h = jnp.dot(h.astype(jnp.bfloat16), w2_ref[...],
                    preferred_element_type=jnp.float32)
        h = h + b2_ref[...]
        h = jnp.maximum(h, neg * h)
        h2_ref[...] = h.astype(jnp.bfloat16)

    # Dense 3 (tiled over d_out) -> tanh
    h3 = jnp.dot(h2_ref[...], w3_ref[...], preferred_element_type=jnp.float32)
    h3 = h3 + b3_ref[...]
    o_ref[...] = jnp.tanh(h3)


# ---------------------------------------------------------------------------
# One-time parameter preparation (hoisted out of the forward path):
# embedding fold, lane padding, bf16 cast of all matmul weights.
# ---------------------------------------------------------------------------
def prepare_generator_params(params, latent, *, lane=128):
    emb = params["embedding"]                      # (C, E)
    w1, b1 = params["w1"], params["b1"]            # (L+E, 2L), (1, 2L)
    w2, b2 = params["w2"], params["b2"]            # (2L, 4L), (1, 4L)
    w3, b3 = params["w3"], params["b3"]            # (4L, F*S), (1, F*S)

    L = latent
    d_h1, d_h2, d_out = w1.shape[1], w2.shape[1], w3.shape[1]
    d_h1_p = _round_up(d_h1, lane)
    d_h2_p = _round_up(d_h2, lane)
    d_out_p = _round_up(d_out, lane)
    C = emb.shape[0]
    f32, bf16 = jnp.float32, jnp.bfloat16

    # Fold embedding + concat into a per-condition bias table:
    #   concat([x, emb[c]]) @ W1 + b1 == x @ W1[:L] + (emb[c] @ W1[L:] + b1)
    bias_tbl = emb.astype(f32) @ w1[L:].astype(f32) + b1.astype(f32)   # (C, 2L)

    return {
        "bias_tbl": jnp.zeros((C, d_h1_p), f32).at[:, :d_h1].set(bias_tbl),
        "w1": jnp.zeros((L, d_h1_p), f32).at[:, :d_h1].set(w1[:L]).astype(bf16),
        "w2": jnp.zeros((d_h1_p, d_h2_p), f32).at[:d_h1, :d_h2].set(w2).astype(bf16),
        "b2": jnp.zeros((1, d_h2_p), f32).at[:, :d_h2].set(b2),
        "w3": jnp.zeros((d_h2_p, d_out_p), f32).at[:d_h2, :d_out].set(w3).astype(bf16),
        "b3": jnp.zeros((1, d_out_p), f32).at[:, :d_out].set(b3),
        "dims": (L, d_h1_p, d_h2_p, d_out, d_out_p),
    }


# ---------------------------------------------------------------------------
# Per-call wrapper: tiny bias gather + batch padding + pallas_call.
# ---------------------------------------------------------------------------
def generator_fnn_pallas(x, condition, prepared, *, tb=None, tn=None):
    """x: (B, latent) f32, condition: (B,) int32 -> (B, features*seq_len) f32."""
    L, d_h1_p, d_h2_p, d_out, d_out_p = prepared["dims"]
    B = x.shape[0]
    f32, bf16 = jnp.float32, jnp.bfloat16

    # --- batch tile: multiple of 16 (bf16 packing), up to 256 (256x256 MXU);
    #     guarantee >=2 grid steps for batches >= 32 so both v7x TCs get work.
    B16 = _round_up(B, 16)
    if tb is None:
        tb = min(B16, 256)
        if B16 >= 32 and B16 // tb < 2:
            tb = _round_up(B16 // 2, 16)
    B_p = _round_up(B, tb)

    # --- d_out tile: lane-dense, bounded so W3 / output tiles stay VMEM-cheap.
    if tn is None:
        tn = min(d_out_p, 512)

    # --- per-call input prep (small): folded-bias gather + batch padding.
    bias1 = jnp.take(prepared["bias_tbl"], condition, axis=0)     # (B, d_h1_p)
    bias1_p = jnp.zeros((B_p, d_h1_p), f32).at[:B].set(bias1)
    x_p = jnp.zeros((B_p, L), bf16).at[:B].set(x.astype(bf16))

    grid = (B_p // tb, d_out_p // tn)

    # --- explicit VMEM budget: resident single-buffered weights +
    #     double-buffered streaming tiles + h2 scratch + headroom.
    resident = 2 * (L * d_h1_p + d_h1_p * d_h2_p) + 4 * d_h2_p
    streamed = 2 * (2 * tb * L + 4 * tb * d_h1_p + 2 * d_h2_p * tn
                    + 4 * tn + 4 * tb * tn)
    scratch = 2 * tb * d_h2_p
    vmem_limit = int(min(56 << 20,
                         max(16 << 20,
                             (resident + streamed + scratch) * 5 // 4 + (4 << 20))))

    cost = pl.CostEstimate(
        flops=2 * B_p * (L * d_h1_p + d_h1_p * d_h2_p + d_h2_p * d_out_p),
        transcendentals=B_p * d_out_p,
        bytes_accessed=(2 * (x_p.size + L * d_h1_p + d_h1_p * d_h2_p
                             + d_h2_p * d_out_p)
                        + 4 * (bias1_p.size + d_h2_p + d_out_p
                               + B_p * d_out_p)),
    )

    out_p = pl.pallas_call(
        generator_fnn_kernel,
        out_shape=jax.ShapeDtypeStruct((B_p, d_out_p), f32),
        grid=grid,
        in_specs=[
            pl.BlockSpec((tb, L), lambda i, j: (i, 0)),              # x tile (bf16)
            pl.BlockSpec((tb, d_h1_p), lambda i, j: (i, 0)),         # folded bias (f32)
            pl.BlockSpec((L, d_h1_p), lambda i, j: (0, 0),
                         pipeline_mode=pl.Buffered(1)),              # W1 resident
            pl.BlockSpec((d_h1_p, d_h2_p), lambda i, j: (0, 0),
                         pipeline_mode=pl.Buffered(1)),              # W2 resident
            pl.BlockSpec((1, d_h2_p), lambda i, j: (0, 0),
                         pipeline_mode=pl.Buffered(1)),              # b2 resident
            pl.BlockSpec((d_h2_p, tn), lambda i, j: (0, j)),         # W3 d_out tile
            pl.BlockSpec((1, tn), lambda i, j: (0, j)),              # b3 d_out tile
        ],
        out_specs=pl.BlockSpec((tb, tn), lambda i, j: (i, j)),
        scratch_shapes=[pltpu.VMEM((tb, d_h2_p), bf16)],             # h2 carry
        compiler_params=pltpu.CompilerParams(
            dimension_semantics=("parallel", "arbitrary"),
            vmem_limit_bytes=vmem_limit,
        ),
        cost_estimate=cost,
    )(x_p, bias1_p, prepared["w1"], prepared["w2"], prepared["b2"],
      prepared["w3"], prepared["b3"])

    return out_p[:B, :d_out]


# ---------------------------------------------------------------------------
# Deterministic parameter init (shapes from GeneratorFNN.__init__)
# ---------------------------------------------------------------------------
def init_params(key, latent, features, seq_len, conditions, embeddings):
    d_in = latent + embeddings
    d_h1 = 2 * latent
    d_h2 = 4 * latent
    d_out = features * seq_len

    ks = jax.random.split(key, 7)
    scale = 0.1
    return {
        "embedding": scale * jax.random.normal(ks[0], (conditions, embeddings), jnp.float32),
        # weights stored (in, out) so the kernel does X @ W
        "w1": scale * jax.random.normal(ks[1], (d_in, d_h1), jnp.float32),
        "b1": scale * jax.random.normal(ks[2], (1, d_h1), jnp.float32),
        "w2": scale * jax.random.normal(ks[3], (d_h1, d_h2), jnp.float32),
        "b2": scale * jax.random.normal(ks[4], (1, d_h2), jnp.float32),
        "w3": scale * jax.random.normal(ks[5], (d_h2, d_out), jnp.float32),
        "b3": scale * jax.random.normal(ks[6], (1, d_out), jnp.float32),
    }


def generator_fnn_ref(x, condition, params):
    """Pure-JAX f32 reference, original (un-folded) math; eval-mode dropout = identity."""
    emb = jnp.take(params["embedding"], condition, axis=0)
    h = jnp.concatenate([x, emb], axis=1)
    h = h @ params["w1"] + params["b1"]
    h = jnp.where(h > 0, h, 0.01 * h)
    h = h @ params["w2"] + params["b2"]
    h = jnp.where(h > 0, h, 0.01 * h)
    h = h @ params["w3"] + params["b3"]
    return jnp.tanh(h)


if __name__ == "__main__":
    # Small shapes consistent with the module's forward.
    latent_vector_size = 16
    features = 2
    sequence_len = 8
    conditions = 4
    embeddings = 8
    batch = 4

    key = jax.random.PRNGKey(0)
    k_params, k_x, k_cond = jax.random.split(key, 3)

    params = init_params(k_params, latent_vector_size, features, sequence_len,
                         conditions, embeddings)
    prepared = prepare_generator_params(params, latent_vector_size)

    x = jax.random.normal(k_x, (batch, latent_vector_size), jnp.float32)
    condition = jax.random.randint(k_cond, (batch,), 0, conditions, jnp.int32)

    out = generator_fnn_pallas(x, condition, prepared)
    out = jax.block_until_ready(out)

    ref = generator_fnn_ref(x, condition, params)
    assert out.shape == (batch, features * sequence_len)
    max_diff = float(jnp.max(jnp.abs(out - ref)))
    # bf16 matmul operands (f32 accumulation): loosened tolerance vs f32 ref.
    assert jnp.allclose(out, ref, atol=2e-2, rtol=2e-2), (
        f"mismatch vs JAX reference (max abs diff = {max_diff})")

    print("KERNEL_OK")
</pallas_src>

<mosaic_0001>
module attributes {stable_mosaic.version = 11 : i64} {
  func.func @generator_fnn_kernel(%arg0: i32, %arg1: i32, %arg2: memref<16x16xbf16, #tpu.memory_space<vmem>>, %arg3: memref<16x128xf32, #tpu.memory_space<vmem>>, %arg4: memref<16x128xbf16, #tpu.memory_space<vmem>>, %arg5: memref<128x128xbf16, #tpu.memory_space<vmem>>, %arg6: memref<1x128xf32, #tpu.memory_space<vmem>>, %arg7: memref<128x128xbf16, #tpu.memory_space<vmem>>, %arg8: memref<1x128xf32, #tpu.memory_space<vmem>>, %arg9: memref<16x128xf32, #tpu.memory_space<vmem>>, %arg10: memref<16x128xbf16, #tpu.memory_space<vmem>>) attributes {dimension_semantics = [#tpu.dimension_semantics<parallel>, #tpu.dimension_semantics<arbitrary>], iteration_bounds = array<i64: 1, 1>, scalar_prefetch = 0 : i64, scratch_operands = 1 : i64, tpu.core_type = #tpu.core_type<tc>, window_params = [{transform_indices = @transform_0, window_bounds = array<i64: 16, 16>}, {transform_indices = @transform_1, window_bounds = array<i64: 16, 128>}, {pipeline_mode = #tpu.pipeline_mode<synchronous>, transform_indices = @transform_2, window_bounds = array<i64: 16, 128>}, {pipeline_mode = #tpu.pipeline_mode<synchronous>, transform_indices = @transform_3, window_bounds = array<i64: 128, 128>}, {pipeline_mode = #tpu.pipeline_mode<synchronous>, transform_indices = @transform_4, window_bounds = array<i64: 1, 128>}, {transform_indices = @transform_5, window_bounds = array<i64: 128, 128>}, {transform_indices = @transform_6, window_bounds = array<i64: 1, 128>}, {transform_indices = @transform_7, window_bounds = array<i64: 16, 128>}]} {
    %c0_i32 = arith.constant 0 : i32
    %0 = arith.cmpi eq, %arg1, %c0_i32 : i32
    %1 = arith.extui %0 : i1 to i32
    %cst = arith.constant 0.00999999977 : f32
    %c0_i32_0 = arith.constant 0 : i32
    %2 = arith.cmpi ne, %1, %c0_i32_0 : i32
    scf.if %2 {
      %c0_9 = arith.constant 0 : index
      %c0_10 = arith.constant 0 : index
      %11 = vector.load %arg2[%c0_9, %c0_10] : memref<16x16xbf16, #tpu.memory_space<vmem>>, vector<16x16xbf16>
      %c0_11 = arith.constant 0 : index
      %c0_12 = arith.constant 0 : index
      %12 = vector.load %arg4[%c0_11, %c0_12] : memref<16x128xbf16, #tpu.memory_space<vmem>>, vector<16x128xbf16>
      %cst_13 = arith.constant dense<0.000000e+00> : vector<16x128xf32>
      %13 = tpu.matmul %11, %12, %cst_13 {dimension_numbers = #tpu.dot_dimension_numbers<[1], [0], [0], [1], [0, 0, 1, 1], [], []>} : vector<16x16xbf16>, vector<16x128xbf16>, vector<16x128xf32> -> vector<16x128xf32>
      %c0_14 = arith.constant 0 : index
      %c0_15 = arith.constant 0 : index
      %14 = vector.load %arg3[%c0_14, %c0_15] : memref<16x128xf32, #tpu.memory_space<vmem>>, vector<16x128xf32>
      %15 = arith.addf %13, %14 : vector<16x128xf32>
      %16 = vector.broadcast %cst : f32 to vector<16x128xf32>
      %17 = arith.mulf %16, %15 : vector<16x128xf32>
      %18 = arith.maximumf %15, %17 : vector<16x128xf32>
      %19 = arith.truncf %18 : vector<16x128xf32> to vector<16x128xbf16>
      %c0_16 = arith.constant 0 : index
      %c0_17 = arith.constant 0 : index
      %20 = vector.load %arg5[%c0_16, %c0_17] : memref<128x128xbf16, #tpu.memory_space<vmem>>, vector<128x128xbf16>
      %cst_18 = arith.constant dense<0.000000e+00> : vector<16x128xf32>
      %21 = tpu.matmul %19, %20, %cst_18 {dimension_numbers = #tpu.dot_dimension_numbers<[1], [0], [0], [1], [0, 0, 1, 1], [], []>} : vector<16x128xbf16>, vector<128x128xbf16>, vector<16x128xf32> -> vector<16x128xf32>
      %c0_19 = arith.constant 0 : index
      %c0_20 = arith.constant 0 : index
      %22 = vector.load %arg6[%c0_19, %c0_20] : memref<1x128xf32, #tpu.memory_space<vmem>>, vector<1x128xf32>
      %23 = vector.broadcast %22 : vector<1x128xf32> to vector<16x128xf32>
      %24 = arith.addf %21, %23 : vector<16x128xf32>
      %25 = vector.broadcast %cst : f32 to vector<16x128xf32>
      %26 = arith.mulf %25, %24 : vector<16x128xf32>
      %27 = arith.maximumf %24, %26 : vector<16x128xf32>
      %28 = arith.truncf %27 : vector<16x128xf32> to vector<16x128xbf16>
      %c0_21 = arith.constant 0 : index
      %c0_22 = arith.constant 0 : index
      %29 = vector.load %arg10[%c0_21, %c0_22] : memref<16x128xbf16, #tpu.memory_space<vmem>>, vector<16x128xbf16>
      tpu.vector_store %arg10[%c0_21, %c0_22], %28 {strides = array<i32>} : memref<16x128xbf16, #tpu.memory_space<vmem>>, vector<16x128xbf16>,
    } else {
    }
    %c0 = arith.constant 0 : index
    %c0_1 = arith.constant 0 : index
    %3 = vector.load %arg10[%c0, %c0_1] : memref<16x128xbf16, #tpu.memory_space<vmem>>, vector<16x128xbf16>
    %c0_2 = arith.constant 0 : index
    %c0_3 = arith.constant 0 : index
    %4 = vector.load %arg7[%c0_2, %c0_3] : memref<128x128xbf16, #tpu.memory_space<vmem>>, vector<128x128xbf16>
    %cst_4 = arith.constant dense<0.000000e+00> : vector<16x128xf32>
    %5 = tpu.matmul %3, %4, %cst_4 {dimension_numbers = #tpu.dot_dimension_numbers<[1], [0], [0], [1], [0, 0, 1, 1], [], []>} : vector<16x128xbf16>, vector<128x128xbf16>, vector<16x128xf32> -> vector<16x128xf32>
    %c0_5 = arith.constant 0 : index
    %c0_6 = arith.constant 0 : index
    %6 = vector.load %arg8[%c0_5, %c0_6] : memref<1x128xf32, #tpu.memory_space<vmem>>, vector<1x128xf32>
    %7 = vector.broadcast %6 : vector<1x128xf32> to vector<16x128xf32>
    %8 = arith.addf %5, %7 : vector<16x128xf32>
    %9 = math.tanh %8 : vector<16x128xf32>
    %c0_7 = arith.constant 0 : index
    %c0_8 = arith.constant 0 : index
    %10 = vector.load %arg9[%c0_7, %c0_8] : memref<16x128xf32, #tpu.memory_space<vmem>>, vector<16x128xf32>
    tpu.vector_store %arg9[%c0_7, %c0_8], %9 {strides = array<i32>} : memref<16x128xf32, #tpu.memory_space<vmem>>, vector<16x128xf32>,
    return
  }
  func.func @transform_0(%arg0: i32, %arg1: i32) -> (i32, i32) {
    %c0_i32 = arith.constant 0 : i32
    %c0_i32_0 = arith.constant 0 : i32
    return %arg0, %c0_i32 : i32, i32
  }
  func.func @transform_1(%arg0: i32, %arg1: i32) -> (i32, i32) {
    %c0_i32 = arith.constant 0 : i32
    %c0_i32_0 = arith.constant 0 : i32
    return %arg0, %c0_i32 : i32, i32
  }
  func.func @transform_2(%arg0: i32, %arg1: i32) -> (i32, i32) {
    %c0_i32 = arith.constant 0 : i32
    %c0_i32_0 = arith.constant 0 : i32
    %c0_i32_1 = arith.constant 0 : i32
    return %c0_i32, %c0_i32_0 : i32, i32
  }
  func.func @transform_3(%arg0: i32, %arg1: i32) -> (i32, i32) {
    %c0_i32 = arith.constant 0 : i32
    %c0_i32_0 = arith.constant 0 : i32
    %c0_i32_1 = arith.constant 0 : i32
    return %c0_i32, %c0_i32_0 : i32, i32
  }
  func.func @transform_4(%arg0: i32, %arg1: i32) -> (i32, i32) {
    %c0_i32 = arith.constant 0 : i32
    %c0_i32_0 = arith.constant 0 : i32
    %c0_i32_1 = arith.constant 0 : i32
    return %c0_i32, %c0_i32_0 : i32, i32
  }
  func.func @transform_5(%arg0: i32, %arg1: i32) -> (i32, i32) {
    %c0_i32 = arith.constant 0 : i32
    %c0_i32_0 = arith.constant 0 : i32
    return %c0_i32, %arg1 : i32, i32
  }
  func.func @transform_6(%arg0: i32, %arg1: i32) -> (i32, i32) {
    %c0_i32 = arith.constant 0 : i32
    %c0_i32_0 = arith.constant 0 : i32
    return %c0_i32, %arg1 : i32, i32
  }
  func.func @transform_7(%arg0: i32, %arg1: i32) -> (i32, i32) {
    %c0_i32 = arith.constant 0 : i32
    return %arg0, %arg1 : i32, i32
  }
}

</mosaic_0001>

<bundles_post_ra>
// kernel: tpu_custom_call.1
= control target key start
LH: loop header
LB: loop body
LE: loop exit
PB: predicated region body
PF: predicated region fallthrough
CT: control target
= control target key end

     0   :  { %12 = vsyncpa [#allocation4], 0  ;;  %s704_s0 = inlined_call_operand.hbm [shape: bf16[16,16], index: 0, kind: input, shape index: {}]   ;;  %s705_s1 = inlined_call_operand.hbm [shape: f32[16,128], index: 1, kind: input, shape index: {}]   ;;  %s706_s2 = inlined_call_operand.hbm [shape: bf16[16,128], index: 2, kind: input, shape index: {}]   ;;  %s707_s3 = inlined_call_operand.hbm [shape: bf16[128,128], index: 3, kind: input, shape index: {}]   ;;  %s708_s4 = inlined_call_operand.vmem [shape: f32[1,128], index: 4, kind: input, shape index: {}]   ;;  %s709_s5 = inlined_call_operand.hbm [shape: bf16[128,128], index: 5, kind: input, shape index: {}]   ;;  %s710_s6 = inlined_call_operand.vmem [shape: f32[1,128], index: 6, kind: input, shape index: {}]   ;;  %s711_s7 = inlined_call_operand.hbm [shape: f32[16,128], index: 7, kind: output, shape index: {}]  }
   0x1   :  { %13 = vsyncpa [#allocation7], 0 }
   0x2   :  { %14 = vsyncpa [#allocation10], 0  ;;  %s33_s26 = sshll.u32 %s705_s1, 4  ;;  %s34_s26 = int_to_ptr.hbm [resolvable:$true] %s33_s26 }
   0x3   :  { %15 = vsyncpa [#allocation5], 0  ;;  %s624_s27 = smov [#allocation6]   ;;  %s625_s29 = smov 128  }
   0x4   :  { %s35_s28 = sshll.u32 %s624_s27, 4  ;;  %s626_s30 = smov 8   ;;  %s36_s28 = int_to_ptr.vmem [resolvable:$true] %s35_s28 }
   0x5   :  { %41 = dma.hbm_to_vmem [thread:$0]  %s34_s26, 256, %s36_s28, [#allocation7], %s625_s29, %s625_s29, %s626_s30  }
   0x6   :  { %s59_s10 = sshll.u32 %s707_s3, 4  ;;  %s627_s11 = smov [#allocation9]   ;;  %s60_s10 = int_to_ptr.hbm [resolvable:$true] %s59_s10 }
   0x7   :  { %s61_s12 = sshll.u32 %s627_s11, 4  ;;  %s20_s14 = sshll.u32 %s704_s0, 4  ;;  %s62_s12 = int_to_ptr.vmem [resolvable:$true] %s61_s12  ;;  %s21_s14 = int_to_ptr.hbm [resolvable:$true] %s20_s14 }
   0x8   :  { %s628_s15 = smov 64   ;;  %s629_s16 = smov 4  }
   0x9   :  { %67 = dma.hbm_to_vmem [thread:$0]  %s60_s10, 1024, %s62_s12, [#allocation10], %s628_s15, %s628_s15, %s629_s16  }
   0xa   :  { %s46_s19 = sshll.u32 %s706_s2, 4  ;;  %s630_s20 = smov [#allocation3]   ;;  %s47_s19 = int_to_ptr.hbm [resolvable:$true] %s46_s19 }
   0xb   :  { %s22_s21 = sshll.u32 %s630_s20, 4  ;;  %s631_s3 = smov [#allocation8]   ;;  %s23_s21 = int_to_ptr.vmem [resolvable:$true] %s22_s21 }
   0xc   :  { %28 = dma.hbm_to_vmem [thread:$0]  %s21_s14, 128, %s23_s21, [#allocation4], %s628_s15, %s628_s15, %s629_s16  }
   0xd   :  { %s48_s22 = sshll.u32 %s631_s3, 4  ;;  %s74_s0 = sshll.u32 %s709_s5, 4  ;;  %s49_s22 = int_to_ptr.vmem [resolvable:$true] %s48_s22  ;;  %s75_s0 = int_to_ptr.hbm [resolvable:$true] %s74_s0 }
   0xe   :  { %54 = dma.hbm_to_vmem [thread:$0]  %s47_s19, 128, %s49_s22, [#allocation7], %s628_s15, %s628_s15, %s629_s16  }
   0xf   :  { %s632_s25 = smov [#allocation11]  }
  0x10   :  { %s76_s26 = sshll.u32 %s632_s25, 4  ;;  %s77_s26 = int_to_ptr.vmem [resolvable:$true] %s76_s26 }
  0x11   :  { %82 = dma.hbm_to_vmem [thread:$0]  %s75_s0, 1024, %s77_s26, [#allocation10], %s628_s15, %s628_s15, %s629_s16  }
  0x12   :  { %616 = dma.done.wait [#allocation4], 128  }
  0x13   :  { %617 = vsyncadd [#allocation4], 4294967168 }
  0x14   :  { %618 = dma.done.wait [#allocation7], 384  }
  0x15   :  { %619 = vsyncadd [#allocation7], 4294966912 }
  0x16   :  { %620 = dma.done.wait [#allocation10], 2048  }
  0x17   :  { %621 = vsyncadd [#allocation10], 4294965248  ;;  %v433_v0 = vld [vmem:[#allocation8] sm:$0xff]  ;;  %v432_v2 = vld [vmem:[#allocation3] sm:$0xff]  ;;  %vm127_vm0 = vcmask 130048   ;;  %s340_s11 = sshll.u32 %s711_s7, 4  ;;  %s341_s11 = int_to_ptr.hbm [resolvable:$true] %s340_s11 }
  0x18   :  { %v441_v1 = vld [vmem:[#allocation9 + $0x38] sm:$0xff]  ;;  %138 = vmatpush.bf16.msra.mxu0 %v433_v0  ;;  %v440_v3 = vld [vmem:[#allocation9 + $0x30] sm:$0xff]  ;;  %v439_v4 = vld [vmem:[#allocation9 + $0x28] sm:$0xff] }
  0x19   :  { %218 = vmatpush.bf16.msra.mxu1 %v441_v1  ;;  %v438_v5 = vld [vmem:[#allocation9 + $0x20] sm:$0xff]  ;;  %v437_v6 = vld [vmem:[#allocation9 + $0x18] sm:$0xff]  ;;  %v436_v7 = vld [vmem:[#allocation9 + $0x10] sm:$0xff] }
  0x1a   :  { %v435_v8 = vld [vmem:[#allocation9 + $0x8] sm:$0xff]  ;;  %v434_v9 = vld [vmem:[#allocation9] sm:$0xff]  ;;  %v450_v10 = vld [vmem:[#allocation11 + $0x38] sm:$0xff] }
  0x1b   :  { %363 = vmatmul.msk.bf16.vlgmr.msra.gmra.mxu0 %vm127_vm0, %v432_v2  ;;  %316 = vmatpush.bf16.msra.mxu2 %v450_v10  ;;  %v114_v12 = vld [vmem:[#allocation6] sm:$0xff]  ;;  %v115_v14 = vld [vmem:[#allocation6 + $0x8] sm:$0xff]  ;;  %v447_v24 = vld [vmem:[#allocation11 + $0x20] sm:$0xff] }
  0x1c   :  { %v449_v22 = vld [vmem:[#allocation11 + $0x30] sm:$0xff]  ;;  %v448_v23 = vld [vmem:[#allocation11 + $0x28] sm:$0xff]  ;;  %v446_v25 = vld [vmem:[#allocation11 + $0x18] sm:$0xff] }
  0x1d   :  { %219 = vmatpush.bf16.msra.mxu1 %v440_v3  ;;  %v445_v26 = vld [vmem:[#allocation11 + $0x10] sm:$0xff]  ;;  %v444_v27 = vld [vmem:[#allocation11 + $0x8] sm:$0xff]  ;;  %v443_v28 = vld [vmem:[#allocation11] sm:$0xff] }
  0x1e   :  { %v466_v30 = vld [vmem:[%s708_s4] ss:$0 sm:$0xff]  ;;  %s633_s4 = smov [#allocation12]  }
  0x1f   :  { %317 = vmatpush.bf16.msra.mxu2 %v449_v22  ;;  %v467_v40 = vld [vmem:[%s710_s6] ss:$0 sm:$0xff]  ;;  %s338_s8 = sshll.u32 %s633_s4, 4  ;;  %s339_s8 = int_to_ptr.vmem [resolvable:$true] %s338_s8 }
  0x21   :  { %220 = vmatpush.bf16.msra.mxu1 %v439_v4 }
  0x23   :  { %318 = vmatpush.bf16.msra.mxu2 %v448_v23 }
  0x25   :  { %221 = vmatpush.bf16.msra.mxu1 %v438_v5 }
  0x27   :  { %319 = vmatpush.bf16.msra.mxu2 %v447_v24 }
  0x29   :  { %222 = vmatpush.bf16.msra.mxu1 %v437_v6 }
  0x2b   :  { %320 = vmatpush.bf16.msra.mxu2 %v446_v25 }
  0x2d   :  { %223 = vmatpush.bf16.msra.mxu1 %v436_v7 }
  0x2f   :  { %321 = vmatpush.bf16.msra.mxu2 %v445_v26 }
  0x31   :  { %224 = vmatpush.bf16.msra.mxu1 %v435_v8 }
  0x33   :  { %322 = vmatpush.bf16.msra.mxu2 %v444_v27 }
  0x35   :  { %225 = vmatpush.bf16.msra.mxu1 %v434_v9 }
  0x37   :  { %323 = vmatpush.bf16.msra.mxu2 %v443_v28 }
  0x98   :  { %v140_v11 = vpop.f32.mrf.mxu0 }
  0x99   :  { %v141_v13 = vadd.f32 %v140_v11, %v114_v12 }
  0x9b   :  { %v145_v16 = vmul.f32 0.01, %v141_v13 }
  0x9d   :  { %v147_v19 = vmax.f32 %v141_v13, %v145_v16 }
  0xa0   :  { %v142_v15 = vpop.f32.mrf.mxu0 }
  0xa1   :  { %v143_v17 = vadd.f32 %v142_v15, %v115_v14 }
  0xa3   :  { %v146_v18 = vmul.f32 0.01, %v143_v17 }
  0xa5   :  { %v148_v20 = vmax.f32 %v143_v17, %v146_v18 }
  0xa7   :  { %v149_v21 = vpack.c.bf16 %v148_v20, %v147_v19 }
  0xa9   :  { %226 = vmatmul.bf16.vlgmr.msra.gmra.mxu1 %v149_v21 }
 0x126   :  { %v227_v29 = vpop.f32.mrf.mxu1 }
 0x127   :  { %v228_v31 = vadd.f32 %v466_v30, %v227_v29 }
 0x129   :  { %v232_v33 = vmul.f32 0.01, %v228_v31 }
 0x12b   :  { %v234_v36 = vmax.f32 %v228_v31, %v232_v33 }
 0x12e   :  { %v229_v32 = vpop.f32.mrf.mxu1 }
 0x12f   :  { %v230_v34 = vadd.f32 %v466_v30, %v229_v32 }
 0x131   :  { %v233_v35 = vmul.f32 0.01, %v230_v34 }
 0x133   :  { %v235_v37 = vmax.f32 %v230_v34, %v233_v35 }
 0x135   :  { %v454_v38 = vpack.c.bf16 %v235_v37, %v234_v36 }
 0x137   :  { %455 = vst [vmem:[#allocation2] sm:$0xff] %v454_v38  }
 0x13e   :  { %v442_v39 = vld [vmem:[#allocation2] sm:$0xff] }
 0x13f   :  { %324 = vmatmul.bf16.vlgmr.msra.gmra.mxu2 %v442_v39 }
 0x1c2   :  { %v325_v41 = vpop.f32.mrf.mxu2 }
 0x1c3   :  { %v326_v42 = vadd.f32 %v467_v40, %v325_v41 }
 0x1c5   :  { %468 = vtanh.f32 %v326_v42 }
 0x1ca   :  { %v327_v43 = vpop.f32.mrf.mxu2 }
 0x1cb   :  { %v469_v44 = vpop.eup %468  ;;  %v328_v45 = vadd.f32 %v467_v40, %v327_v43 }
 0x1cc   :  { %332 = vst [vmem:[#allocation12] sm:$0xff] %v469_v44 }
 0x1cd   :  { %470 = vtanh.f32 %v328_v45 }
 0x1d3   :  { %v471_v46 = vpop.eup %470 }
 0x1d4   :  { %333 = vst [vmem:[#allocation12 + $0x8] sm:$0xff] %v471_v46 }
 0x1d5   :  { %346 = dma.vmem_to_hbm [thread:$0]  %s339_s8, 256, %s341_s11, [#allocation5], %s625_s29, %s625_s29, %s626_s30  }
 0x1d6   :  { %622 = dma.done.wait [#allocation5], 256  }
 0x1d7   :  { %623 = vsyncadd [#allocation5], 4294967040 }
 0x1d8   :  { %351 = vsyncpa [#allocation4], 1 }
 0x1d9   :  { %352 = vsyncpa [#allocation7], 1 }
 0x1da   :  { %353 = vsyncpa [#allocation10], 1 }
 0x1db   :  { %354 = vsyncpa [#allocation5], 1 }

</bundles_post_ra>
